<compile_context>
chip_gen: v7x
topology: tpu7x:2x2x1
jax: 0.10.0
libtpu: 0.0.40
codegen_flags: <defaults>
</compile_context>

<pallas_src>
import functools

import jax
import jax.numpy as jnp
import numpy as np
from jax import lax
from jax.experimental import pallas as pl
from jax.experimental.pallas import tpu as pltpu

# ---- static "module config" -------------------------------------------------
IRREP_DIMS = (1, 1, 1, 3, 3)                     # 3x0e + 2x1o
IRREPS_DIM = sum(IRREP_DIMS)                     # 9
SPLIT_NUM_IRREPS = (2, 3)                        # [2, -1] resolved over 5 irreps
S0 = sum(IRREP_DIMS[:SPLIT_NUM_IRREPS[0]])       # 2 irreps rows go through the Linear

TB_MAX = 4096   # batch rows per grid step: double-buffered (TB,128) f32 in+out ~ 8 MiB.
                # TODO(synk): on v7x-only deployments TB_MAX = 8192 is still within the
                # 32 MiB scoped VMEM limit and gets closer to the 3.2 TB/s HBM roofline.


def _round_up(a: int, m: int) -> int:
    return ((a + m - 1) // m) * m


def _cdiv(a: int, b: int) -> int:
    return -(-a // b)


def _choose_tb(batch: int) -> int:
    """Batch rows per grid step.

    Rules:
      * batch <= 8: one block covering the whole batch (block dim == full array dim,
        always layout-legal).
      * otherwise: sublane-aligned (multiple of 8), capped at TB_MAX, at least two grid
        steps, and — when the step count is small — an even number of steps so the
        'parallel' axis splits evenly across v7x's two TensorCores.
    Ragged tails are handled by a partial last block (no padding, no trailing slice).
    """
    if batch <= 8:
        return batch
    tb = min(TB_MAX, _round_up(_cdiv(batch, 2), 8))
    steps = _cdiv(batch, tb)
    if steps < 8 and steps % 2 == 1:
        tb = _round_up(_cdiv(batch, steps + 1), 8)
    return tb


def _separable_kernel(x_ref, w_ref, b_ref, o_ref, *, k2):
    """One batch block per grid step.

    x_ref : (TB, NBLK)  first NBLK columns of the flattened irreps*channels axis
    w_ref : (NBLK, NBLK) block-diag(W, ..., W) in the top-left (k2, k2); zeros elsewhere
    b_ref : (1, NBLK)    bias tiled over the S0 transformed rows; zeros elsewhere
    o_ref : (TB, NBLK)   aliased with x in HBM; columns >= NBLK are never touched
    """
    x = x_ref[...]                                              # (TB, NBLK)
    # Native (TB,128)@(128,128) MXU tile; the zero rows/cols of w_ref contribute exactly
    # 0, so lanes >= k2 of `y` are 0 + 0 bias and get discarded by the blend below.
    y = jnp.dot(x, w_ref[...], preferred_element_type=jnp.float32) + b_ref[...]
    lane = lax.broadcasted_iota(jnp.int32, x.shape, 1)
    # Single unmasked full-tile store; identity lanes pass through bit-exact.
    o_ref[...] = jnp.where(lane < k2, y, x).astype(o_ref.dtype)


def separable_forward(x, w, b):
    """x: (B, IRREPS_DIM, C) f32, w: (C, C), b: (C,) -> (B, IRREPS_DIM, C) f32."""
    B, M, C = x.shape
    assert M == IRREPS_DIM
    flat = M * C                                   # 288
    k2 = S0 * C                                    # 64 transformed columns
    nblk = min(flat, _round_up(k2, 128))           # 128: kernel window on the lane axis

    # Zero-extended block-diagonal weight / tiled bias: one matmul covers both
    # transformed irreps rows and the pass-through lanes multiply exact zeros.
    w2 = jnp.zeros((nblk, nblk), w.dtype)
    for s in range(S0):
        w2 = w2.at[s * C:(s + 1) * C, s * C:(s + 1) * C].set(w)
    b2 = jnp.zeros((1, nblk), b.dtype).at[0, :k2].set(jnp.tile(b, S0))

    tb = _choose_tb(B)
    grid = (_cdiv(B, tb),)                         # partial last block handled by Pallas
    x2 = x.reshape(B, flat)                        # bitcast view; no copy

    kernel = functools.partial(_separable_kernel, k2=k2)

    out2 = pl.pallas_call(
        kernel,
        out_shape=jax.ShapeDtypeStruct((B, flat), x.dtype),
        grid_spec=pltpu.PrefetchScalarGridSpec(
            num_scalar_prefetch=0,
            grid=grid,
            in_specs=[
                pl.BlockSpec((tb, nblk), lambda i: (i, 0)),     # x: first nblk cols only
                pl.BlockSpec((nblk, nblk), lambda i: (0, 0)),   # W2: grid-invariant
                pl.BlockSpec((1, nblk), lambda i: (0, 0)),      # b2: grid-invariant
            ],
            out_specs=pl.BlockSpec((tb, nblk), lambda i: (i, 0)),
        ),
        # Alias the flattened input to the output: the identity irreps rows living in
        # columns [nblk, flat) are never DMA'd; they simply stay in place in HBM.  The
        # caller should donate x (see __main__) so XLA does not insert a defensive copy.
        input_output_aliases={0: 0},
        compiler_params=pltpu.CompilerParams(
            dimension_semantics=("parallel",),
            vmem_limit_bytes=32 * 1024 * 1024,
        ),
    )(x2, w2, b2)

    return out2.reshape(B, M, C)


def separable_reference(x, w, b):
    """Plain-JAX reference mirroring the PyTorch forward."""
    x0, x1 = x[:, :S0, :], x[:, S0:, :]            # SplitIrreps along dim=-2
    y0 = jnp.einsum("bsc,cd->bsd", x0, w) + b      # sub_module[0] = Linear on channels
    return jnp.concatenate([y0, x1], axis=-2)      # sub_module[1] = None; cat_after=True


if __name__ == "__main__":
    B, M, C = 4, IRREPS_DIM, 32

    key = jax.random.PRNGKey(0)
    kx, kw, kb = jax.random.split(key, 3)
    x = jax.random.normal(kx, (B, M, C), dtype=jnp.float32)
    # Deterministic Linear(C, C) params (synthetic; no checkpoint load).
    w = jax.random.normal(kw, (C, C), dtype=jnp.float32) * (1.0 / jnp.sqrt(C))
    bias = jax.random.normal(kb, (C,), dtype=jnp.float32) * 0.1

    ref = separable_reference(x, w, bias)          # reference before the (donated) kernel

    # donate_argnums=0: the aliased operand is consumed in place -> no defensive copy
    # before the pallas custom call.  Do not reuse `x` after this call.
    fwd = jax.jit(separable_forward, donate_argnums=0)
    out = jax.block_until_ready(fwd(x, w, bias))

    np.testing.assert_allclose(np.asarray(out), np.asarray(ref), rtol=1e-5, atol=1e-5)
    print("KERNEL_OK")
</pallas_src>

<mosaic_0001>
module attributes {stable_mosaic.version = 11 : i64} {
  func.func @_separable_kernel(%arg0: i32, %arg1: memref<4x128xf32, #tpu.memory_space<vmem>>, %arg2: memref<128x128xf32, #tpu.memory_space<vmem>>, %arg3: memref<1x128xf32, #tpu.memory_space<vmem>>, %arg4: memref<4x128xf32, #tpu.memory_space<vmem>>) attributes {dimension_semantics = [#tpu.dimension_semantics<parallel>], iteration_bounds = array<i64: 1>, scalar_prefetch = 0 : i64, scratch_operands = 0 : i64, tpu.core_type = #tpu.core_type<tc>, window_params = [{transform_indices = @transform_0, window_bounds = array<i64: 4, 128>}, {pipeline_mode = #tpu.pipeline_mode<synchronous>, transform_indices = @transform_1, window_bounds = array<i64: 128, 128>}, {pipeline_mode = #tpu.pipeline_mode<synchronous>, transform_indices = @transform_2, window_bounds = array<i64: 1, 128>}, {transform_indices = @transform_3, window_bounds = array<i64: 4, 128>}]} {
    %c0 = arith.constant 0 : index
    %c0_0 = arith.constant 0 : index
    %0 = vector.load %arg1[%c0, %c0_0] : memref<4x128xf32, #tpu.memory_space<vmem>>, vector<4x128xf32>
    %c0_1 = arith.constant 0 : index
    %c0_2 = arith.constant 0 : index
    %1 = vector.load %arg2[%c0_1, %c0_2] : memref<128x128xf32, #tpu.memory_space<vmem>>, vector<128x128xf32>
    %cst = arith.constant dense<0.000000e+00> : vector<4x128xf32>
    %2 = tpu.matmul %0, %1, %cst {dimension_numbers = #tpu.dot_dimension_numbers<[1], [0], [0], [1], [0, 0, 1, 1], [], []>} : vector<4x128xf32>, vector<128x128xf32>, vector<4x128xf32> -> vector<4x128xf32>
    %c0_3 = arith.constant 0 : index
    %c0_4 = arith.constant 0 : index
    %3 = vector.load %arg3[%c0_3, %c0_4] : memref<1x128xf32, #tpu.memory_space<vmem>>, vector<1x128xf32>
    %4 = vector.broadcast %3 : vector<1x128xf32> to vector<4x128xf32>
    %5 = arith.addf %2, %4 : vector<4x128xf32>
    %6 = tpu.iota {dimensions = array<i32: 1>} : vector<4x128xi32>
    %c64_i32 = arith.constant 64 : i32
    %7 = vector.broadcast %c64_i32 : i32 to vector<4x128xi32>
    %8 = arith.cmpi slt, %6, %7 : vector<4x128xi32>
    %9 = arith.select %8, %5, %0 : vector<4x128xi1>, vector<4x128xf32>
    %c0_5 = arith.constant 0 : index
    %c0_6 = arith.constant 0 : index
    %10 = vector.load %arg4[%c0_5, %c0_6] : memref<4x128xf32, #tpu.memory_space<vmem>>, vector<4x128xf32>
    tpu.vector_store %arg4[%c0_5, %c0_6], %9 {strides = array<i32>} : memref<4x128xf32, #tpu.memory_space<vmem>>, vector<4x128xf32>,
    return
  }
  func.func @transform_0(%arg0: i32) -> (i32, i32) {
    %c0_i32 = arith.constant 0 : i32
    %c0_i32_0 = arith.constant 0 : i32
    return %arg0, %c0_i32 : i32, i32
  }
  func.func @transform_1(%arg0: i32) -> (i32, i32) {
    %c0_i32 = arith.constant 0 : i32
    %c0_i32_0 = arith.constant 0 : i32
    %c0_i32_1 = arith.constant 0 : i32
    return %c0_i32, %c0_i32_0 : i32, i32
  }
  func.func @transform_2(%arg0: i32) -> (i32, i32) {
    %c0_i32 = arith.constant 0 : i32
    %c0_i32_0 = arith.constant 0 : i32
    %c0_i32_1 = arith.constant 0 : i32
    return %c0_i32, %c0_i32_0 : i32, i32
  }
  func.func @transform_3(%arg0: i32) -> (i32, i32) {
    %c0_i32 = arith.constant 0 : i32
    %c0_i32_0 = arith.constant 0 : i32
    return %arg0, %c0_i32 : i32, i32
  }
}

</mosaic_0001>

<bundles_post_ra>
// kernel: separable_forward.1
= control target key start
LH: loop header
LB: loop body
LE: loop exit
PB: predicated region body
PF: predicated region fallthrough
CT: control target
= control target key end

     0   :  { %v197_v0 = vmov 0.0|0.0   ;;  %vm198_vm0 = vmmov 0   ;;  %v199_v4 = vmov 0.0   ;;  %v108_v27 = vlaneseq  ;;  %s277_s1 = inlined_call_operand.vmem [shape: f32[128,128], index: 1, kind: input, shape index: {}]   ;;  %s278_s0 = inlined_call_operand.vmem [shape: f32[4,288], index: 0, kind: input, shape index: {}, may-alias: {0,3}]   ;;  %s279_s2 = inlined_call_operand.vmem [shape: f32[1,128], index: 2, kind: input, shape index: {}]   ;;  %s280_s3 = inlined_call_operand.vmem [shape: f32[4,288], index: 3, kind: output, shape index: {}, may-alias: {0,3}]  }
   0x1   :  { %170 = vmatprep.subr.bf16.mxu0 %v197_v0  ;;  %v15_v1 = vld [vmem:[%s277_s1] sm:$0xff]  ;;  %v16_v2 = vld [vmem:[%s277_s1 + $0x8] sm:$0xff]  ;;  %v17_v3 = vld [vmem:[%s277_s1 + $0x10] sm:$0xff]  ;;  %167 = vmatprep.mubr.msk.f32.mxu0 %vm198_vm0, %v199_v4 }
   0x2   :  { %v171_v5 = vpack.c.bf16 %v16_v2, %v15_v1  ;;  %v18_v6 = vld [vmem:[%s277_s1 + $0x18] sm:$0xff]  ;;  %v19_v8 = vld [vmem:[%s277_s1 + $0x20] sm:$0xff]  ;;  %v20_v9 = vld [vmem:[%s277_s1 + $0x28] sm:$0xff]  ;;  %v109_v28 = vand.u32 127, %v108_v27 }
   0x3   :  { %v174_v7 = vpack.c.bf16 %v18_v6, %v17_v3  ;;  %v177_v10 = vpack.c.bf16 %v20_v9, %v19_v8  ;;  %v21_v11 = vld [vmem:[%s277_s1 + $0x30] sm:$0xff]  ;;  %v22_v12 = vld [vmem:[%s277_s1 + $0x38] sm:$0xff]  ;;  %v23_v14 = vld [vmem:[%s277_s1 + $0x40] sm:$0xff] }
   0x4   :  { %172 = vmatpush3.bf16.msra.mxu0 %v171_v5  ;;  %v180_v13 = vpack.c.bf16 %v22_v12, %v21_v11  ;;  %v24_v15 = vld [vmem:[%s277_s1 + $0x48] sm:$0xff]  ;;  %v25_v17 = vld [vmem:[%s277_s1 + $0x50] sm:$0xff]  ;;  %v26_v18 = vld [vmem:[%s277_s1 + $0x58] sm:$0xff]  ;;  %vm110_vm1 = vcmp.lt.s32.totalorder %v109_v28, 64 }
   0x5   :  { %173 = vmatprep.subr.bf16.mxu0 %v197_v0  ;;  %v183_v16 = vpack.c.bf16 %v24_v15, %v23_v14  ;;  %v186_v19 = vpack.c.bf16 %v26_v18, %v25_v17  ;;  %v27_v20 = vld [vmem:[%s277_s1 + $0x60] sm:$0xff]  ;;  %v28_v21 = vld [vmem:[%s277_s1 + $0x68] sm:$0xff]  ;;  %v29_v23 = vld [vmem:[%s277_s1 + $0x70] sm:$0xff] }
   0x6   :  { %v189_v22 = vpack.c.bf16 %v28_v21, %v27_v20  ;;  %v30_v24 = vld [vmem:[%s277_s1 + $0x78] sm:$0xff]  ;;  %v14_v26 = vld [vmem:[%s278_s0] sm:$0xf] }
   0x7   :  { %v192_v25 = vpack.c.bf16 %v30_v24, %v29_v23  ;;  %v117_v29 = vld [vmem:[%s279_s2] ss:$0 sm:$0xff] }
   0x8   :  { %175 = vmatpush3.bf16.msra.mxu0 %v174_v7 }
   0x9   :  { %176 = vmatprep.subr.bf16.mxu0 %v197_v0 }
   0xc   :  { %178 = vmatpush3.bf16.msra.mxu0 %v177_v10 }
   0xd   :  { %179 = vmatprep.subr.bf16.mxu0 %v197_v0 }
  0x10   :  { %181 = vmatpush3.bf16.msra.mxu0 %v180_v13 }
  0x11   :  { %182 = vmatprep.subr.bf16.mxu0 %v197_v0 }
  0x14   :  { %184 = vmatpush3.bf16.msra.mxu0 %v183_v16 }
  0x15   :  { %185 = vmatprep.subr.bf16.mxu0 %v197_v0 }
  0x18   :  { %187 = vmatpush3.bf16.msra.mxu0 %v186_v19 }
  0x19   :  { %188 = vmatprep.subr.bf16.mxu0 %v197_v0 }
  0x1c   :  { %190 = vmatpush3.bf16.msra.mxu0 %v189_v22 }
  0x1d   :  { %191 = vmatprep.subr.bf16.mxu0 %v197_v0 }
  0x20   :  { %193 = vmatpush3.bf16.msra.mxu0 %v192_v25 }
  0x23   :  { %168 = vmatmul.mubr.f32.vlgmr.msra.gmra.mrb[0].mxu0 %v14_v26 }
  0xf6   :  { %v104_v30 = vpop.f32.mrb[0].mxu0 }
  0xf7   :  { %v105_v31 = vadd.f32 %v117_v29, %v104_v30  ;;  %v169_v32 = vpop.f32.mrb[1].mxu0 }
  0xf9   :  { %v111_v33 = vsel %vm110_vm1, %v105_v31, %v14_v26 }
  0xfa   :  { %112 = vst [vmem:[%s280_s3] sm:$0xf] %v111_v33 }

</bundles_post_ra>
